<compile_context>
chip_gen: v7x
topology: tpu7x:2x2x1
jax: 0.10.0
libtpu: 0.0.40
codegen_flags: <defaults>
</compile_context>

<pallas_src>
import functools

import jax
import jax.numpy as jnp
from jax.experimental import pallas as pl
from jax.experimental.pallas import tpu as pltpu

# Clamp bounds from the PyTorch module (clamp_min then clamp_max). They round
# in float32 exactly as torch does (tensor-dtype cast).
CLAMP_MIN = float(1692758127)
CLAMP_MAX = float(1724832688)

LANES = 128


def _conv1x1_clamp_kernel(w_ref, b_ref, x_ref, o_ref, *, cin, cout):
    # w_ref: (cout, cin) f32 SMEM        b_ref: (cout,) f32 SMEM
    # x_ref: (cin, TMB, 128) f32 VMEM    o_ref: (cout, TMB, 128) f32 VMEM
    for o in range(cout):                      # static unroll (cout = 3)
        # x_ref[i] is a dense (TMB, 128) tile; scalar weights come from SMEM
        # and lower to vector-scalar ops (no per-iter broadcast_in_dim).
        acc = x_ref[0] * w_ref[o, 0]
        for i in range(1, cin):                # static unroll (cin = 3)
            acc = acc + x_ref[i] * w_ref[o, i]
        acc = acc + b_ref[o]
        acc = jnp.maximum(acc, CLAMP_MIN)      # torch.clamp_min
        acc = jnp.minimum(acc, CLAMP_MAX)      # torch.clamp_max
        o_ref[o] = acc.astype(o_ref.dtype)


def conv1x1_clamp(x_nchw, weight, bias, *, tmb_max=2048):
    """x_nchw: (N, C, H, W) f32; weight: (Cout, Cin) f32; bias: (Cout,) f32.

    tmb_max: max sublane rows per tile (tmb_max * 128 lanes; 2048 -> ~3 MiB
    f32 per x block, ~12 MiB double-buffered in+out).
    """
    N, C, H, W = x_nchw.shape
    Cout, Cin = weight.shape
    assert Cin == C

    M = H * W
    R = pl.cdiv(M, LANES)          # rows of 128 lanes
    M_pad = R * LANES

    # Free reshape (keeps NCHW memory order); pad spatial axis to 128 lanes.
    x3 = x_nchw.reshape(N, C, M)
    if M_pad != M:
        x3 = jnp.pad(x3, ((0, 0), (0, 0), (0, M_pad - M)))
    x4 = x3.reshape(N, C, R, LANES)

    # Tile the (R, 128) spatial slab.  tmb must be a multiple of 8 when it is
    # smaller than R (the (8,128) block constraint); a full-extent block is
    # always legal.
    tmb = R if R <= tmb_max else tmb_max
    if tmb < R:
        tmb = (tmb // 8) * 8

    # v7x has 2 TensorCores sharded over "parallel" grid axes: make sure the
    # grid has at least 2 programs when the shapes allow it.
    if N * pl.cdiv(R, tmb) < 2 and R >= 16:
        tmb = ((pl.cdiv(R, 2) + 7) // 8) * 8

    grid = (N, pl.cdiv(R, tmb))

    kernel = functools.partial(_conv1x1_clamp_kernel, cin=C, cout=Cout)

    out4 = pl.pallas_call(
        kernel,
        out_shape=jax.ShapeDtypeStruct((N, Cout, R, LANES), x_nchw.dtype),
        grid=grid,
        in_specs=[
            pl.BlockSpec(memory_space=pltpu.MemorySpace.SMEM),   # weight (Cout, Cin)
            pl.BlockSpec(memory_space=pltpu.MemorySpace.SMEM),   # bias   (Cout,)
            pl.BlockSpec((None, C, tmb, LANES), lambda n, m: (n, 0, m, 0)),
        ],
        out_specs=pl.BlockSpec((None, Cout, tmb, LANES), lambda n, m: (n, 0, m, 0)),
        compiler_params=pltpu.CompilerParams(
            dimension_semantics=("parallel", "parallel")),
    )(weight, bias, x4)

    out3 = out4.reshape(N, Cout, M_pad)
    if M_pad != M:
        out3 = out3[:, :, :M]
    return out3.reshape(N, Cout, H, W)


def _reference(x, weight, bias):
    ref = jnp.einsum("nchw,oc->nohw", x, weight) + bias[None, :, None, None]
    return jnp.clip(ref, CLAMP_MIN, CLAMP_MAX)


if __name__ == "__main__":
    key = jax.random.PRNGKey(0)
    k_x, k_w, k_b, k_x2 = jax.random.split(key, 4)

    # Small shapes consistent with the module: Conv2d(3, 3, kernel_size=1).
    N, C, H, W = 2, 3, 16, 16
    Cout = 3

    # Scale input so the (enormous) clamp bounds are actually exercised:
    # some conv outputs land below min, some between, some above max.
    x = jax.random.normal(k_x, (N, C, H, W), dtype=jnp.float32) * 2.0e9

    # Deterministic PyTorch-style uniform init for Conv2d(3, 3, 1).
    fan_in = C * 1 * 1
    bound = 1.0 / (fan_in ** 0.5)
    weight = jax.random.uniform(k_w, (Cout, C), jnp.float32, -bound, bound)
    bias = jax.random.uniform(k_b, (Cout,), jnp.float32, -bound, bound)

    out = conv1x1_clamp(x, weight, bias)
    jax.block_until_ready(out)

    ref = _reference(x, weight, bias)
    assert out.shape == (N, Cout, H, W)
    assert jnp.allclose(out, ref, atol=1e-3, rtol=1e-5)

    # Second check: spatial size NOT a multiple of 128 (exercises pad + slice).
    x2 = jax.random.normal(k_x2, (1, C, 10, 10), dtype=jnp.float32) * 2.0e9
    out2 = conv1x1_clamp(x2, weight, bias)
    jax.block_until_ready(out2)
    ref2 = _reference(x2, weight, bias)
    assert out2.shape == (1, Cout, 10, 10)
    assert jnp.allclose(out2, ref2, atol=1e-3, rtol=1e-5)

    print("KERNEL_OK")
</pallas_src>

<mosaic_0001>
module attributes {stable_mosaic.version = 11 : i64} {
  func.func @_conv1x1_clamp_kernel(%arg0: i32, %arg1: i32, %arg2: memref<3x3xf32, #tpu.memory_space<smem>>, %arg3: memref<3xf32, #tpu.memory_space<smem>>, %arg4: memref<1x3x2x128xf32, #tpu.memory_space<vmem>>, %arg5: memref<1x3x2x128xf32, #tpu.memory_space<vmem>>) attributes {dimension_semantics = [#tpu.dimension_semantics<parallel>, #tpu.dimension_semantics<parallel>], iteration_bounds = array<i64: 2, 1>, scalar_prefetch = 0 : i64, scratch_operands = 0 : i64, tpu.core_type = #tpu.core_type<tc>, window_params = [{transform_indices = @transform_0, window_bounds = array<i64: 3, 3>}, {transform_indices = @transform_1, window_bounds = array<i64: 3>}, {transform_indices = @transform_2, window_bounds = array<i64: 1, 3, 2, 128>}, {transform_indices = @transform_3, window_bounds = array<i64: 1, 3, 2, 128>}]} {
    %c0 = arith.constant 0 : index
    %c0_0 = arith.constant 0 : index
    %c0_1 = arith.constant 0 : index
    %c0_2 = arith.constant 0 : index
    %0 = vector.load %arg4[%c0, %c0_0, %c0_1, %c0_2] : memref<1x3x2x128xf32, #tpu.memory_space<vmem>>, vector<1x1x2x128xf32>
    %1 = vector.shape_cast %0 : vector<1x1x2x128xf32> to vector<2x128xf32>
    %c0_3 = arith.constant 0 : index
    %c0_4 = arith.constant 0 : index
    %2 = memref.load %arg2[%c0_3, %c0_4] : memref<3x3xf32, #tpu.memory_space<smem>>
    %3 = vector.broadcast %2 : f32 to vector<2x128xf32>
    %4 = arith.mulf %1, %3 : vector<2x128xf32>
    %c0_5 = arith.constant 0 : index
    %c1 = arith.constant 1 : index
    %c0_6 = arith.constant 0 : index
    %c0_7 = arith.constant 0 : index
    %5 = vector.load %arg4[%c0_5, %c1, %c0_6, %c0_7] : memref<1x3x2x128xf32, #tpu.memory_space<vmem>>, vector<1x1x2x128xf32>
    %6 = vector.shape_cast %5 : vector<1x1x2x128xf32> to vector<2x128xf32>
    %c0_8 = arith.constant 0 : index
    %c1_9 = arith.constant 1 : index
    %7 = memref.load %arg2[%c0_8, %c1_9] : memref<3x3xf32, #tpu.memory_space<smem>>
    %8 = vector.broadcast %7 : f32 to vector<2x128xf32>
    %9 = arith.mulf %6, %8 : vector<2x128xf32>
    %10 = arith.addf %4, %9 : vector<2x128xf32>
    %c0_10 = arith.constant 0 : index
    %c2 = arith.constant 2 : index
    %c0_11 = arith.constant 0 : index
    %c0_12 = arith.constant 0 : index
    %11 = vector.load %arg4[%c0_10, %c2, %c0_11, %c0_12] : memref<1x3x2x128xf32, #tpu.memory_space<vmem>>, vector<1x1x2x128xf32>
    %12 = vector.shape_cast %11 : vector<1x1x2x128xf32> to vector<2x128xf32>
    %c0_13 = arith.constant 0 : index
    %c2_14 = arith.constant 2 : index
    %13 = memref.load %arg2[%c0_13, %c2_14] : memref<3x3xf32, #tpu.memory_space<smem>>
    %14 = vector.broadcast %13 : f32 to vector<2x128xf32>
    %15 = arith.mulf %12, %14 : vector<2x128xf32>
    %16 = arith.addf %10, %15 : vector<2x128xf32>
    %c0_15 = arith.constant 0 : index
    %17 = memref.load %arg3[%c0_15] : memref<3xf32, #tpu.memory_space<smem>>
    %18 = vector.broadcast %17 : f32 to vector<2x128xf32>
    %19 = arith.addf %16, %18 : vector<2x128xf32>
    %cst = arith.constant 1.69275814E+9 : f32
    %20 = vector.broadcast %cst : f32 to vector<2x128xf32>
    %21 = arith.maximumf %19, %20 : vector<2x128xf32>
    %cst_16 = arith.constant 1.72483264E+9 : f32
    %22 = vector.broadcast %cst_16 : f32 to vector<2x128xf32>
    %23 = arith.minimumf %21, %22 : vector<2x128xf32>
    %c0_17 = arith.constant 0 : index
    %c0_18 = arith.constant 0 : index
    %c0_19 = arith.constant 0 : index
    %c0_20 = arith.constant 0 : index
    %24 = vector.load %arg5[%c0_17, %c0_18, %c0_19, %c0_20] : memref<1x3x2x128xf32, #tpu.memory_space<vmem>>, vector<1x1x2x128xf32>
    %25 = vector.shape_cast %24 : vector<1x1x2x128xf32> to vector<2x128xf32>
    %26 = vector.shape_cast %23 : vector<2x128xf32> to vector<1x1x2x128xf32>
    tpu.vector_store %arg5[%c0_17, %c0_18, %c0_19, %c0_20], %26 {strides = array<i32>} : memref<1x3x2x128xf32, #tpu.memory_space<vmem>>, vector<1x1x2x128xf32>,
    %c0_21 = arith.constant 0 : index
    %c0_22 = arith.constant 0 : index
    %c0_23 = arith.constant 0 : index
    %c0_24 = arith.constant 0 : index
    %27 = vector.load %arg4[%c0_21, %c0_22, %c0_23, %c0_24] : memref<1x3x2x128xf32, #tpu.memory_space<vmem>>, vector<1x1x2x128xf32>
    %28 = vector.shape_cast %27 : vector<1x1x2x128xf32> to vector<2x128xf32>
    %c1_25 = arith.constant 1 : index
    %c0_26 = arith.constant 0 : index
    %29 = memref.load %arg2[%c1_25, %c0_26] : memref<3x3xf32, #tpu.memory_space<smem>>
    %30 = vector.broadcast %29 : f32 to vector<2x128xf32>
    %31 = arith.mulf %28, %30 : vector<2x128xf32>
    %c0_27 = arith.constant 0 : index
    %c1_28 = arith.constant 1 : index
    %c0_29 = arith.constant 0 : index
    %c0_30 = arith.constant 0 : index
    %32 = vector.load %arg4[%c0_27, %c1_28, %c0_29, %c0_30] : memref<1x3x2x128xf32, #tpu.memory_space<vmem>>, vector<1x1x2x128xf32>
    %33 = vector.shape_cast %32 : vector<1x1x2x128xf32> to vector<2x128xf32>
    %c1_31 = arith.constant 1 : index
    %c1_32 = arith.constant 1 : index
    %34 = memref.load %arg2[%c1_31, %c1_32] : memref<3x3xf32, #tpu.memory_space<smem>>
    %35 = vector.broadcast %34 : f32 to vector<2x128xf32>
    %36 = arith.mulf %33, %35 : vector<2x128xf32>
    %37 = arith.addf %31, %36 : vector<2x128xf32>
    %c0_33 = arith.constant 0 : index
    %c2_34 = arith.constant 2 : index
    %c0_35 = arith.constant 0 : index
    %c0_36 = arith.constant 0 : index
    %38 = vector.load %arg4[%c0_33, %c2_34, %c0_35, %c0_36] : memref<1x3x2x128xf32, #tpu.memory_space<vmem>>, vector<1x1x2x128xf32>
    %39 = vector.shape_cast %38 : vector<1x1x2x128xf32> to vector<2x128xf32>
    %c1_37 = arith.constant 1 : index
    %c2_38 = arith.constant 2 : index
    %40 = memref.load %arg2[%c1_37, %c2_38] : memref<3x3xf32, #tpu.memory_space<smem>>
    %41 = vector.broadcast %40 : f32 to vector<2x128xf32>
    %42 = arith.mulf %39, %41 : vector<2x128xf32>
    %43 = arith.addf %37, %42 : vector<2x128xf32>
    %c1_39 = arith.constant 1 : index
    %44 = memref.load %arg3[%c1_39] : memref<3xf32, #tpu.memory_space<smem>>
    %45 = vector.broadcast %44 : f32 to vector<2x128xf32>
    %46 = arith.addf %43, %45 : vector<2x128xf32>
    %cst_40 = arith.constant 1.69275814E+9 : f32
    %47 = vector.broadcast %cst_40 : f32 to vector<2x128xf32>
    %48 = arith.maximumf %46, %47 : vector<2x128xf32>
    %cst_41 = arith.constant 1.72483264E+9 : f32
    %49 = vector.broadcast %cst_41 : f32 to vector<2x128xf32>
    %50 = arith.minimumf %48, %49 : vector<2x128xf32>
    %c0_42 = arith.constant 0 : index
    %c1_43 = arith.constant 1 : index
    %c0_44 = arith.constant 0 : index
    %c0_45 = arith.constant 0 : index
    %51 = vector.load %arg5[%c0_42, %c1_43, %c0_44, %c0_45] : memref<1x3x2x128xf32, #tpu.memory_space<vmem>>, vector<1x1x2x128xf32>
    %52 = vector.shape_cast %51 : vector<1x1x2x128xf32> to vector<2x128xf32>
    %53 = vector.shape_cast %50 : vector<2x128xf32> to vector<1x1x2x128xf32>
    tpu.vector_store %arg5[%c0_42, %c1_43, %c0_44, %c0_45], %53 {strides = array<i32>} : memref<1x3x2x128xf32, #tpu.memory_space<vmem>>, vector<1x1x2x128xf32>,
    %c0_46 = arith.constant 0 : index
    %c0_47 = arith.constant 0 : index
    %c0_48 = arith.constant 0 : index
    %c0_49 = arith.constant 0 : index
    %54 = vector.load %arg4[%c0_46, %c0_47, %c0_48, %c0_49] : memref<1x3x2x128xf32, #tpu.memory_space<vmem>>, vector<1x1x2x128xf32>
    %55 = vector.shape_cast %54 : vector<1x1x2x128xf32> to vector<2x128xf32>
    %c2_50 = arith.constant 2 : index
    %c0_51 = arith.constant 0 : index
    %56 = memref.load %arg2[%c2_50, %c0_51] : memref<3x3xf32, #tpu.memory_space<smem>>
    %57 = vector.broadcast %56 : f32 to vector<2x128xf32>
    %58 = arith.mulf %55, %57 : vector<2x128xf32>
    %c0_52 = arith.constant 0 : index
    %c1_53 = arith.constant 1 : index
    %c0_54 = arith.constant 0 : index
    %c0_55 = arith.constant 0 : index
    %59 = vector.load %arg4[%c0_52, %c1_53, %c0_54, %c0_55] : memref<1x3x2x128xf32, #tpu.memory_space<vmem>>, vector<1x1x2x128xf32>
    %60 = vector.shape_cast %59 : vector<1x1x2x128xf32> to vector<2x128xf32>
    %c2_56 = arith.constant 2 : index
    %c1_57 = arith.constant 1 : index
    %61 = memref.load %arg2[%c2_56, %c1_57] : memref<3x3xf32, #tpu.memory_space<smem>>
    %62 = vector.broadcast %61 : f32 to vector<2x128xf32>
    %63 = arith.mulf %60, %62 : vector<2x128xf32>
    %64 = arith.addf %58, %63 : vector<2x128xf32>
    %c0_58 = arith.constant 0 : index
    %c2_59 = arith.constant 2 : index
    %c0_60 = arith.constant 0 : index
    %c0_61 = arith.constant 0 : index
    %65 = vector.load %arg4[%c0_58, %c2_59, %c0_60, %c0_61] : memref<1x3x2x128xf32, #tpu.memory_space<vmem>>, vector<1x1x2x128xf32>
    %66 = vector.shape_cast %65 : vector<1x1x2x128xf32> to vector<2x128xf32>
    %c2_62 = arith.constant 2 : index
    %c2_63 = arith.constant 2 : index
    %67 = memref.load %arg2[%c2_62, %c2_63] : memref<3x3xf32, #tpu.memory_space<smem>>
    %68 = vector.broadcast %67 : f32 to vector<2x128xf32>
    %69 = arith.mulf %66, %68 : vector<2x128xf32>
    %70 = arith.addf %64, %69 : vector<2x128xf32>
    %c2_64 = arith.constant 2 : index
    %71 = memref.load %arg3[%c2_64] : memref<3xf32, #tpu.memory_space<smem>>
    %72 = vector.broadcast %71 : f32 to vector<2x128xf32>
    %73 = arith.addf %70, %72 : vector<2x128xf32>
    %cst_65 = arith.constant 1.69275814E+9 : f32
    %74 = vector.broadcast %cst_65 : f32 to vector<2x128xf32>
    %75 = arith.maximumf %73, %74 : vector<2x128xf32>
    %cst_66 = arith.constant 1.72483264E+9 : f32
    %76 = vector.broadcast %cst_66 : f32 to vector<2x128xf32>
    %77 = arith.minimumf %75, %76 : vector<2x128xf32>
    %c0_67 = arith.constant 0 : index
    %c2_68 = arith.constant 2 : index
    %c0_69 = arith.constant 0 : index
    %c0_70 = arith.constant 0 : index
    %78 = vector.load %arg5[%c0_67, %c2_68, %c0_69, %c0_70] : memref<1x3x2x128xf32, #tpu.memory_space<vmem>>, vector<1x1x2x128xf32>
    %79 = vector.shape_cast %78 : vector<1x1x2x128xf32> to vector<2x128xf32>
    %80 = vector.shape_cast %77 : vector<2x128xf32> to vector<1x1x2x128xf32>
    tpu.vector_store %arg5[%c0_67, %c2_68, %c0_69, %c0_70], %80 {strides = array<i32>} : memref<1x3x2x128xf32, #tpu.memory_space<vmem>>, vector<1x1x2x128xf32>,
    return
  }
  func.func @transform_0(%arg0: i32, %arg1: i32) -> (i32, i32) {
    %c0_i32 = arith.constant 0 : i32
    %c0_i32_0 = arith.constant 0 : i32
    %c0_i32_1 = arith.constant 0 : i32
    return %c0_i32, %c0_i32_0 : i32, i32
  }
  func.func @transform_1(%arg0: i32, %arg1: i32) -> i32 {
    %c0_i32 = arith.constant 0 : i32
    %c0_i32_0 = arith.constant 0 : i32
    return %c0_i32 : i32
  }
  func.func @transform_2(%arg0: i32, %arg1: i32) -> (i32, i32, i32, i32) {
    %c0_i32 = arith.constant 0 : i32
    %c0_i32_0 = arith.constant 0 : i32
    %c0_i32_1 = arith.constant 0 : i32
    return %arg0, %c0_i32, %arg1, %c0_i32_0 : i32, i32, i32, i32
  }
  func.func @transform_3(%arg0: i32, %arg1: i32) -> (i32, i32, i32, i32) {
    %c0_i32 = arith.constant 0 : i32
    %c0_i32_0 = arith.constant 0 : i32
    %c0_i32_1 = arith.constant 0 : i32
    return %arg0, %c0_i32, %arg1, %c0_i32_0 : i32, i32, i32, i32
  }
}

</mosaic_0001>

<bundles_post_ra>
// kernel: tpu_custom_call.1
= control target key start
LH: loop header
LB: loop body
LE: loop exit
PB: predicated region body
PF: predicated region fallthrough
CT: control target
= control target key end

     0   :  { %8 = vsyncpa [#allocation5], 0  ;;  %s965_s0 = inlined_call_operand.hbm [shape: f32[3,3], index: 0, kind: input, shape index: {}]   ;;  %s966_s1 = inlined_call_operand.vmem [shape: f32[3], index: 1, kind: input, shape index: {}]   ;;  %s967_s2 = inlined_call_operand.hbm [shape: f32[2,3,2,128], index: 2, kind: input, shape index: {}]   ;;  %s968_s3 = inlined_call_operand.hbm [shape: f32[2,3,2,128], index: 3, kind: output, shape index: {}]  }
   0x1   :  { %9 = vsyncpa [#allocation6], 0 }
   0x2   :  { %10 = vsyncpa [#allocation3], 0 }
   0x3   :  { %12 = vsyncpa [#allocation3 + $0x1], 0 }
   0x4   :  { %13 = vsyncpa [#allocation4], 0 }
   0x5   :  { %15 = vsyncpa [#allocation4 + $0x1], 0  ;;  %s719_s12 = smov 0   ;;  %s721_s13 = smov 0  }
   0x6   :  { %s723_s14 = smov 0   ;;  %s725_s15 = smov 0  }
   0x7   :  { %s727_s16 = smov 0   ;;  %s729_s17 = smov 0  }
   0x8 LB: > { %s419_s18 = sadd.s32 4294967295, %s689_s17   ;;  %s420_s19 = sadd.s32 4294967294, %s689_s17   ;;  %s689_s17 = sphi %s729_s17, %s21_s17   ;;  %s685_s16 = sphi %s727_s16, %s989_s16   ;;  %s681_s15 = sphi %s725_s15, %s988_s15   ;;  %s677_s14 = sphi %s723_s14, %s987_s14   ;;  %s673_s13 = sphi %s721_s13, %s986_s13   ;;  %s669_s12 = sphi %s719_s12, %s985_s12  }
   0x9   : > { %s84_s20 = sadd.s32 1, %s677_s14  ;;  %p91_p0 = scmp.ne.s32.totalorder %s677_s14, %s673_s13 }
   0xa   : > { %p92_p1 = scmp.eq.s32.totalorder %s689_s17, 0  ;;  %p97_p2 = scmp.ne.s32.totalorder %s673_s13, %s669_s12 }
   0xb   : > { %p757_p3 = scmp.eq.s32.totalorder %s419_s18, 0  ;;  %p123_p4 = scmp.eq.s32.totalorder %s419_s18, 1 }
   0xc   : > { %p93_p5 = por %p92_p1, %p91_p0  ;;  %p129_p6 = scmp.eq.s32.totalorder %s420_s19, 1 }
   0xd   : > { %s973_s21 = scalar_select %p757_p3, 1, 0 }
   0xe   : > { %p763_p7 = por %p757_p3, %p97_p2  ;;  %p767_p8 = por %p123_p4, %p91_p0 }
   0xf   : > { %p771_p9 = por %p129_p6, %p97_p2  ;;  %p421_p10 = scmp.ge.s32.totalorder %s689_s17, 1 }
  0x10   : > { %s974_s22 = scalar_select %p763_p7, 1, 0 }
  0x11   : > { %s975_s23 = scalar_select %p767_p8, 1, 0 }
  0x12   : > { %s976_s24 = scalar_select %p771_p9, 1, 0 }
  0x13   : > { %p136_p11 = scmp.lt.s32.totalorder %s689_s17, 3  ;;  %p483_p1 = scmp.lt.s32.totalorder %s689_s17, 2 }
  0x14   : > { %s158_s28 = sshll.u32 %s966_s1, 4  ;;  %s169_s4 = sand.u32 1, %s677_s14   ;;  %s159_s28 = int_to_ptr.vmem [resolvable:$true] %s158_s28 }
  0x15   : > { %p778_p13 = pnand %p421_p10, %p136_p11  ;;  %p788_p4 = pnand %p483_p1, %p93_p5 }
  0x16   : > { %s33_s5 = sadd.s32 1, %s685_s16  ;;  %s541_s8 = scalar_lea.hbm %s965_s0, 64 }
  0x17   : > { %p466_p0 = pneg %p778_p13  ;;  %p542_p5 = scmp.ne.s32.totalorder %s965_s0, %s541_s8 }
  0x18   : > { %p548_p1 = scmp.lt.u32.totalorder %s541_s8, %s965_s0 }
  0x19   : > { %p794_p2 = pnand %p466_p0, %p757_p3 }
  0x1b   : > { %p543_p6 = pneg %p794_p2 }
  0x1d   : > { %p544_p10 = pnand %p543_p6, %p542_p5 }
  0x1f   : > { %p545_p11 = pneg %p544_p10 }
  0x21   : > { %p550_p0 = pnand %p548_p1, %p545_p11 }
  0x23   : > { %553 = shalt.err (!%p550_p0)
}
  0x24   : > { %s691_s19 = smov [#allocation2]   ;;  %s554_s6 = scalar_lea.vmem %s159_s28, 16 }
  0x25   : > { %469 = dma.hbm_to_smem (!%p794_p2), %s965_s0, 64, %s691_s19, [#allocation5]  }
  0x26   : > { %p555_p12 = scmp.ne.s32.totalorder %s159_s28, %s554_s6  ;;  %p562_p7 = scmp.lt.s32.totalorder %s159_s28, %s159_s28 }
  0x27   : > { %p563_p5 = scmp.lt.s32.totalorder %s554_s6, %s554_s6 }
  0x28   : > { %p557_p9 = pnand %p555_p12, %p543_p6 }
  0x29   : > { %p564_p10 = por %p563_p5, %p562_p7 }
  0x2a   : > { %p558_p8 = pneg %p557_p9 }
  0x2c   : > { %p565_p3 = pnand %p564_p10, %p558_p8 }
  0x2e   : > { %568 = shalt.err (!%p565_p3)
}
  0x2f   : > { %s692_s7 = smov [#allocation7]   ;;  %p35_p11 = scmp.ge.s32.totalorder %s33_s5, 2 }
  0x30   : > { %472 = dma.vmem_to_smem (!%p794_p2), %s159_s28, 16, %s692_s7, [#allocation6]  }
  0x31   : > { %s450_s8 = smul.u32 6, %s169_s4  ;;  %s991_s5 = smov (%p35_p11, %s33_s5), 0 }
  0x32   : > { %s451_s9 = smul.u32 96, %s685_s16  ;;  %s79_s10 = ssub.s32 %s685_s16, %s991_s5 }
  0x33   : > { %s173_s11 = scalar_lea.vmem [#allocation8], %s450_s8  ;;  %p82_p3 = scmp.eq.s32.totalorder %s79_s10, 0 }
  0x34   : > { %s181_s18 = sshll.u32 %s173_s11, 4  ;;  %s828_s26 = scalar_lea.hbm %s967_s2, %s451_s9  ;;  %s830_s18 = int_to_ptr.vmem [resolvable:$true] %s181_s18 }
  0x35   : > { %s835_s28 = scalar_select %p82_p3, %s677_s14, %s84_s20  }
  0x36   : > { %s839_s27 = scalar_lea.sflag [#allocation3], %s169_s4  ;;  %s569_s6 = scalar_lea.hbm %s828_s26, 96 }
  0x37   : > { %p570_p7 = scmp.ne.s32.totalorder %s828_s26, %s569_s6  ;;  %p571_p8 = pneg %p788_p4 }
  0x38   : > { %s574_s9 = scalar_lea.hbm %s967_s2, 192  ;;  %p575_p2 = scmp.lt.u32.totalorder %s828_s26, %s967_s2 }
  0x39   : > { %p572_p9 = pnand %p571_p8, %p570_p7  ;;  %p576_p6 = scmp.lt.u32.totalorder %s574_s9, %s569_s6 }
  0x3a   : > { %p578_p0 = scmp.lt.u32.totalorder %s569_s6, %s828_s26 }
  0x3b   : > { %p573_p12 = pneg %p572_p9  ;;  %p577_p1 = por %p576_p6, %p575_p2 }
  0x3d   : > { %p579_p5 = por %p578_p0, %p577_p1 }
  0x3f   : > { %p580_p10 = pnand %p579_p5, %p573_p12 }
  0x41   : > { %583 = shalt.err (!%p580_p10)
}
  0x42   : > { %s584_s20 = scalar_lea.vmem %s830_s18, 96  ;;  %s693_s4 = smov [#allocation8]  }
  0x43   : > { %p585_p11 = scmp.ne.s32.totalorder %s830_s18, %s584_s20  ;;  %s589_s30 = sshll.u32 %s693_s4, 4  ;;  %s590_s30 = int_to_ptr.vmem [resolvable:$false] %s589_s30 }
  0x44   : > { %s591_s19 = scalar_lea.vmem %s590_s30, 192  ;;  %p592_p9 = scmp.lt.s32.totalorder %s830_s18, %s590_s30 }
  0x45   : > { %p587_p3 = pnand %p585_p11, %p571_p8  ;;  %p593_p2 = scmp.lt.s32.totalorder %s591_s19, %s584_s20 }
  0x47   : > { %p588_p7 = pneg %p587_p3  ;;  %p594_p6 = por %p593_p2, %p592_p9 }
  0x49   : > { %p595_p1 = pnand %p594_p6, %p588_p7 }
  0x4b   : > { %598 = shalt.err (!%p595_p1)
}
  0x4c   : > { %s694_s6 = smov 32   ;;  %s695_s7 = smov 2  }
  0x4d   : > { %476 = dma.hbm_to_vmem [thread:$0]  (!%p788_p4), %s828_s26, 96, %s830_s18, %s839_s27, %s694_s6, %s694_s6, %s695_s7  }
  0x4e   : > { %193 = sbr.rel (%p778_p13) target bundleno = 133 (0x85), region = 32  ;;  %p980_p8 = scmp.ne.s32.totalorder (!%p778_p13), %s973_s21, 0 }
  0x55   : > { %652 = dma.done.wait (%p980_p8), [#allocation5], 64  }
  0x56   : > { %654 = vsyncadd (%p980_p8), [#allocation5], 4294967232 }
  0x57   : > { %656 = dma.done.wait (%p980_p8), [#allocation6], 16  }
  0x58   : > { %658 = vsyncadd (%p980_p8), [#allocation6], 4294967280  ;;  %s878_s8 = sand.u32 1, %s673_s13   ;;  %p981_p13 = scmp.ne.s32.totalorder %s974_s22, 0 }
  0x59   : > { %s452_s25 = smul.u32 6, %s878_s8  ;;  %s204_s29 = scalar_lea.sflag [#allocation3], %s878_s8 }
  0x5b   : > { %s884_s18 = scalar_lea.vmem [#allocation8], %s452_s25 }
  0x5c   : > { %660 = dma.done.wait (%p981_p13), %s204_s29, 96  }
  0x5d   : > { %662 = vsyncadd (%p981_p13), %s204_s29, 4294967200 }
  0x5e   : > { %212 = sfence }
  0x5f   : > { %s232_s21 = sld [smem:[#allocation2]]  ;;  %s430_s26 = sld [smem:[#allocation2 + $0x1]]  ;;  %v231_v0 = vld [vmem:[%s884_s18] sm:$0x3]  ;;  %v429_v1 = vld [vmem:[%s884_s18 + $0x2] sm:$0x3] }
  0x60   : > { %s432_s27 = sld [smem:[#allocation2 + $0x2]]  ;;  %s890_s9 = sld [smem:[#allocation7]]  ;;  %v431_v3 = vld [vmem:[%s884_s18 + $0x4] sm:$0x3]  ;;  %v253_v6 = vld [vmem:[%s884_s18] sm:$0x3] }
  0x61   : > { %s433_s10 = sld [smem:[#allocation2 + $0x80]]  ;;  %s435_s11 = sld [smem:[#allocation2 + $0x81]]  ;;  %v434_v9 = vld [vmem:[%s884_s18 + $0x2] sm:$0x3]  ;;  %v436_v12 = vld [vmem:[%s884_s18 + $0x4] sm:$0x3] }
  0x62   : > { %s437_s20 = sld [smem:[#allocation2 + $0x82]]  ;;  %s894_s4 = sld [smem:[#allocation7 + $0x1]]  ;;  %v274_v16 = vld [vmem:[%s884_s18] sm:$0x3]  ;;  %v441_v17 = vld [vmem:[%s884_s18 + $0x2] sm:$0x3] }
  0x63   : > { %s440_s22 = sld [smem:[#allocation2 + $0x100]]  ;;  %s442_s30 = sld [smem:[#allocation2 + $0x101]]  ;;  %v443_v21 = vld [vmem:[%s884_s18 + $0x4] sm:$0x3] }
  0x64   : > { %s444_s19 = sld [smem:[#allocation2 + $0x102]]  ;;  %s230_s7 = scalar_lea.vmem [#allocation9], %s452_s25 }
  0x65   : > { %v233_v2 = vstv %s232_s21  ;;  %v238_v5 = vstv %s430_s26  ;;  %s899_s6 = sld [smem:[#allocation7 + $0x2]]  ;;  %s310_s29 = sshll.u32 %s230_s7, 4  ;;  %s911_s29 = int_to_ptr.vmem [resolvable:$true] %s310_s29 }
  0x66   : > { %v234_v4 = vmul.f32 %v233_v2, %v231_v0  ;;  %v239_v7 = vmul.f32 %v429_v1, %v238_v5  ;;  %v244_v8 = vstv %s432_s27  ;;  %v248_v18 = vstv %s890_s9  ;;  %s453_s18 = smul.u32 96, %s681_s15  ;;  %s296_s25 = scalar_lea.sflag [#allocation4], %s878_s8 }
  0x67   : > { %v245_v10 = vmul.f32 %v431_v3, %v244_v8  ;;  %v255_v11 = vstv %s433_s10  ;;  %v259_v15 = vstv %s435_s11  ;;  %s599_s9 = scalar_lea.vmem %s911_s29, 96  ;;  %p982_p12 = scmp.ne.s32.totalorder %s975_s23, 0 }
  0x68   : > { %v240_v13 = vadd.f32 %v239_v7, %v234_v4  ;;  %v256_v14 = vmul.f32 %v255_v11, %v253_v6  ;;  %v260_v19 = vmul.f32 %v434_v9, %v259_v15  ;;  %v264_v20 = vstv %s437_s20  ;;  %s916_s27 = scalar_lea.hbm %s968_s3, %s453_s18  ;;  %p600_p4 = scmp.ne.s32.totalorder %s911_s29, %s599_s9 }
  0x69   : > { %v265_v23 = vmul.f32 %v436_v12, %v264_v20  ;;  %v276_v24 = vstv %s440_s22  ;;  %v280_v25 = vstv %s442_s30  ;;  %v268_v31 = vstv %s894_s4  ;;  %s696_s15 = smov [#allocation9]  }
  0x6a   : > { %v246_v22 = vadd.f32 %v245_v10, %v240_v13  ;;  %v261_v26 = vadd.f32 %v260_v19, %v256_v14  ;;  %v277_v27 = vmul.f32 %v276_v24, %v274_v16  ;;  %v281_v28 = vmul.f32 %v441_v17, %v280_v25  ;;  %p601_p0 = pnand %p600_p4, %p982_p12  ;;  %s603_s10 = sshll.u32 %s696_s15, 4  ;;  %s604_s10 = int_to_ptr.vmem [resolvable:$false] %s603_s10 }
  0x6b   : > { %v285_v29 = vstv %s444_s19  ;;  %v289_v36 = vstv %s899_s6  ;;  %s605_s11 = scalar_lea.vmem %s604_s10, 192  ;;  %p606_p10 = scmp.lt.s32.totalorder %s911_s29, %s604_s10 }
  0x6c   : > { %v249_v30 = vadd.f32 %v248_v18, %v246_v22  ;;  %v286_v32 = vmul.f32 %v443_v21, %v285_v29  ;;  %v266_v33 = vadd.f32 %v265_v23, %v261_v26  ;;  %v282_v34 = vadd.f32 %v281_v28, %v277_v27  ;;  %p602_p5 = pneg %p601_p0  ;;  %p607_p11 = scmp.lt.s32.totalorder %s605_s11, %s599_s9 }
  0x6e   : > { %v250_v35 = vmax.f32 %v249_v30, 1.6927581e+09  ;;  %v269_v37 = vadd.f32 %v268_v31, %v266_v33  ;;  %v287_v38 = vadd.f32 %v286_v32, %v282_v34  ;;  %p608_p3 = por %p607_p11, %p606_p10 }
  0x70   : > { %v251_v39 = vmin.f32 %v250_v35, 1.7248326e+09  ;;  %v270_v40 = vmax.f32 %v269_v37, 1.6927581e+09  ;;  %v290_v41 = vadd.f32 %v289_v36, %v287_v38  ;;  %p609_p7 = pnand %p608_p3, %p602_p5 }
  0x72   : > { %252 = vst [vmem:[%s230_s7] sm:$0x3] %v251_v39  ;;  %v271_v42 = vmin.f32 %v270_v40, 1.7248326e+09  ;;  %v291_v43 = vmax.f32 %v290_v41, 1.6927581e+09 }
  0x74   : > { %439 = vst [vmem:[%s230_s7 + $0x2] sm:$0x3] %v271_v42  ;;  %v292_v44 = vmin.f32 %v291_v43, 1.7248326e+09 }
  0x76   : > { %446 = vst [vmem:[%s230_s7 + $0x4] sm:$0x3] %v292_v44 }
  0x77   : > { %612 = shalt.err (!%p609_p7)
}
  0x78   : > { %s613_s20 = scalar_lea.hbm %s916_s27, 96  ;;  %s617_s30 = scalar_lea.hbm %s968_s3, 192 }
  0x79   : > { %p614_p9 = scmp.ne.s32.totalorder %s916_s27, %s613_s20  ;;  %p618_p1 = scmp.lt.u32.totalorder %s916_s27, %s968_s3 }
  0x7a   : > { %p619_p8 = scmp.lt.u32.totalorder %s617_s30, %s613_s20  ;;  %p621_p4 = scmp.lt.u32.totalorder %s613_s20, %s916_s27 }
  0x7b   : > { %p615_p2 = pnand %p614_p9, %p982_p12 }
  0x7c   : > { %p620_p13 = por %p619_p8, %p618_p1 }
  0x7d   : > { %p616_p6 = pneg %p615_p2 }
  0x7e   : > { %p622_p0 = por %p621_p4, %p620_p13 }
  0x80   : > { %p623_p5 = pnand %p622_p0, %p616_p6 }
  0x82   : > { %626 = shalt.err (!%p623_p5)
}
  0x83   : > { %s697_s7 = smov 32   ;;  %s698_s18 = smov 2  }
  0x84   : > { %464 = dma.vmem_to_hbm [thread:$0]  (%p982_p12), %s911_s29, 96, %s916_s27, %s296_s25, %s697_s7, %s697_s7, %s698_s18  }
  0x85 PF: > { %s325_s21 = sand.u32 1, %s669_s12   ;;  %p983_p10 = scmp.ne.s32.totalorder %s976_s24, 0 }
  0x86   : > { %p984_p11 = scmp.ge.s32.totalorder %s689_s17, 2  ;;  %s326_s26 = scalar_lea.sflag [#allocation4], %s325_s21 }
  0x88   : > { %p478_p3 = pnand %p984_p11, %p983_p10 }
  0x8a   : > { %664 = dma.done.wait (!%p478_p3), %s326_s26, 96  }
  0x8b   : > { %666 = vsyncadd (!%p478_p3), %s326_s26, 4294967200  ;;  %s21_s17 = sadd.s32 1, %s689_s17   ;;  %s985_s12 = smov %s673_s13 }
  0x8c   : > { %p18_p7 = scmp.ge.s32.totalorder %s21_s17, 4   ;;  %s986_s13 = smov %s677_s14 }
  0x8d   : > { %s987_s14 = smov %s835_s28  ;;  %s988_s15 = smov %s685_s16 }
  0x8e   : > { %s989_s16 = smov %s991_s5  ;;  %20 = sbr.rel (!%p18_p7) target bundleno = 8 (0x8), region = 91 }
  0x95   :  { %331 = vsyncpa [#allocation3], 1 }
  0x96   :  { %333 = vsyncpa [#allocation3 + $0x1], 1 }
  0x97   :  { %334 = vsyncpa [#allocation4], 1 }
  0x98   :  { %336 = vsyncpa [#allocation4 + $0x1], 1 }
  0x99   :  { %337 = vsyncpa [#allocation5], 1 }
  0x9a   :  { %339 = vsyncpa [#allocation5 + $0x1], 1 }
  0x9b   :  { %340 = vsyncpa [#allocation6], 1 }
  0x9c   :  { %342 = vsyncpa [#allocation6 + $0x1], 1 }

</bundles_post_ra>
